<compile_context>
chip_gen: v5e
topology: v5e:2x2
jax: 0.10.0
libtpu: 0.0.40
codegen_flags: <defaults>
</compile_context>

<pallas_src>
import functools

import jax
import jax.numpy as jnp
from jax.experimental import pallas as pl
from jax.experimental.pallas import tpu as pltpu

N_HIDDEN_1 = 64
N_HIDDEN_2 = 64
N_OUTPUT = 1

# Batch tile: multiple of 256 fills the MXU M dimension on v6e/v7x (2x128 on
# v5e) and keeps the lane-dense output block a multiple of 128.
TILE_B = 256


def mlp_kernel(x_ref, w1_ref, b1_ref, w2_ref, b2_ref, w3_ref, b3_ref, o_ref):
    """Fused 3-layer MLP forward for one (TILE_B, n_input) batch tile.

    x / w refs are bf16 (MXU-rate operands), biases f32, accumulation f32.
    o_ref block is (1, 1, TILE_B): batch on the lane axis (lane-dense stores).
    """
    x = x_ref[...]                                                 # (TILE_B, n_in) bf16

    # Layer 1: (TILE_B, n_in) @ (n_in, H1) -> f32 accum, f32 bias + ReLU.
    h1 = jnp.dot(x, w1_ref[...], preferred_element_type=jnp.float32)
    h1 = jnp.maximum(h1 + b1_ref[...], 0.0)

    # Layer 2: (TILE_B, H1) @ (H1, H2).
    h2 = jnp.dot(h1.astype(jnp.bfloat16), w2_ref[...],
                 preferred_element_type=jnp.float32)
    h2 = jnp.maximum(h2 + b2_ref[...], 0.0)

    # Layer 3 computed as (1, H2) x (TILE_B, H2)^T -> (1, TILE_B) so the result
    # is already lane-dense (no width-1 output column / masked stores).
    y = jax.lax.dot_general(
        w3_ref[...], h2.astype(jnp.bfloat16),
        dimension_numbers=(((1,), (1,)), ((), ())),
        preferred_element_type=jnp.float32,
    )                                                              # (1, TILE_B)
    o_ref[0] = (y + b3_ref[0, 0]).astype(o_ref.dtype)              # scalar bias from SMEM


@jax.jit
def mlp_forward(x, params):
    """y = l3(relu(l2(relu(l1(x))))) with x: (batch, n_input) -> (batch, 1)."""
    w1, b1, w2, b2, w3, b3 = params
    batch, n_in = x.shape

    num_tiles = pl.cdiv(batch, TILE_B)
    padded = num_tiles * TILE_B
    if padded != batch:
        # Zero-pad the ragged final tile; padded rows are dropped after the call.
        x = jnp.pad(x, ((0, padded - batch), (0, 0)))

    # bf16 operands: halves HBM bytes on the (memory-bound) x stream and runs
    # the MXU at its bf16 rate. Biases stay f32; accumulation is f32.
    xb = x.astype(jnp.bfloat16)
    w1b = w1.astype(jnp.bfloat16)
    w2b = w2.astype(jnp.bfloat16)
    w3b = w3.reshape(1, N_HIDDEN_2).astype(jnp.bfloat16)   # row-vector layout for l3
    b3s = b3.reshape(1, 1).astype(jnp.float32)

    out = pl.pallas_call(
        mlp_kernel,
        out_shape=jax.ShapeDtypeStruct((num_tiles, 1, TILE_B), jnp.float32),
        grid=(num_tiles,),
        in_specs=[
            # x: streamed one batch tile per grid step (double-buffered by Pallas).
            pl.BlockSpec((TILE_B, n_in), lambda i: (i, 0)),
            # Weights / hidden biases: constant block index -> resident in VMEM.
            pl.BlockSpec((n_in, N_HIDDEN_1), lambda i: (0, 0)),        # w1
            pl.BlockSpec((1, N_HIDDEN_1), lambda i: (0, 0)),           # b1
            pl.BlockSpec((N_HIDDEN_1, N_HIDDEN_2), lambda i: (0, 0)),  # w2
            pl.BlockSpec((1, N_HIDDEN_2), lambda i: (0, 0)),           # b2
            pl.BlockSpec((1, N_HIDDEN_2), lambda i: (0, 0)),           # w3 (1, H2)
            # l3 bias: true scalar in SMEM.
            pl.BlockSpec((1, 1), lambda i: (0, 0),
                         memory_space=pltpu.MemorySpace.SMEM),         # b3
        ],
        # Lane-dense output slab: one (1, TILE_B) row per batch tile.
        out_specs=pl.BlockSpec((1, 1, TILE_B), lambda i: (i, 0, 0)),
        compiler_params=pltpu.CompilerParams(
            # Independent batch tiles: shard across both TensorCores on v7x.
            dimension_semantics=("parallel",),
        ),
    )(xb, w1b, b1, w2b, b2, w3b, b3s)

    # (num_tiles, 1, TILE_B) is batch order when flattened -> (batch, 1).
    return out.reshape(padded, 1)[:batch]


def init_params(key, n_input):
    # Deterministic init mimicking torch.nn.Linear default:
    # uniform(-1/sqrt(fan_in), 1/sqrt(fan_in)) for both weight and bias.
    # Weights are stored (in, out), i.e. transposed relative to torch.
    def linear_init(k, fan_in, fan_out):
        kw, kb = jax.random.split(k)
        bound = 1.0 / jnp.sqrt(jnp.float32(fan_in))
        w = jax.random.uniform(kw, (fan_in, fan_out), jnp.float32, -bound, bound)
        b = jax.random.uniform(kb, (1, fan_out), jnp.float32, -bound, bound)
        return w, b

    k1, k2, k3 = jax.random.split(key, 3)
    w1, b1 = linear_init(k1, n_input, N_HIDDEN_1)
    w2, b2 = linear_init(k2, N_HIDDEN_1, N_HIDDEN_2)
    w3, b3 = linear_init(k3, N_HIDDEN_2, N_OUTPUT)
    return (w1, b1, w2, b2, w3, b3)


def reference_forward(x, params):
    # Pure f32 reference of the torch module's forward.
    w1, b1, w2, b2, w3, b3 = params
    h1 = jnp.maximum(x @ w1 + b1, 0.0)
    h2 = jnp.maximum(h1 @ w2 + b2, 0.0)
    return h2 @ w3 + b3


if __name__ == "__main__":
    key = jax.random.PRNGKey(0)
    k_x, k_p = jax.random.split(key)

    batch = 8
    n_input = 32  # stand-in for the number of tabular features in x_train

    x = jax.random.normal(k_x, (batch, n_input), jnp.float32)
    params = init_params(k_p, n_input)

    out = mlp_forward(x, params)
    out = jax.block_until_ready(out)

    ref = reference_forward(x, params)
    assert out.shape == (batch, N_OUTPUT)
    # bf16 MXU operands (f32 accumulation) -> slightly looser tolerance than f32.
    assert jnp.allclose(out, ref, atol=3e-2, rtol=3e-2), float(
        jnp.max(jnp.abs(out - ref)))

    print("KERNEL_OK")
</pallas_src>

<mosaic_0001>
module attributes {stable_mosaic.version = 11 : i64} {
  func.func @mlp_kernel(%arg0: i32, %arg1: memref<256x32xbf16, #tpu.memory_space<vmem>>, %arg2: memref<32x64xbf16, #tpu.memory_space<vmem>>, %arg3: memref<1x64xf32, #tpu.memory_space<vmem>>, %arg4: memref<64x64xbf16, #tpu.memory_space<vmem>>, %arg5: memref<1x64xf32, #tpu.memory_space<vmem>>, %arg6: memref<1x64xbf16, #tpu.memory_space<vmem>>, %arg7: memref<1x1xf32, #tpu.memory_space<smem>>, %arg8: memref<1x1x256xf32, #tpu.memory_space<vmem>>) attributes {dimension_semantics = [#tpu.dimension_semantics<parallel>], iteration_bounds = array<i64: 1>, scalar_prefetch = 0 : i64, scratch_operands = 0 : i64, tpu.core_type = #tpu.core_type<tc>, window_params = [{transform_indices = @transform_0, window_bounds = array<i64: 256, 32>}, {pipeline_mode = #tpu.pipeline_mode<synchronous>, transform_indices = @transform_1, window_bounds = array<i64: 32, 64>}, {pipeline_mode = #tpu.pipeline_mode<synchronous>, transform_indices = @transform_2, window_bounds = array<i64: 1, 64>}, {pipeline_mode = #tpu.pipeline_mode<synchronous>, transform_indices = @transform_3, window_bounds = array<i64: 64, 64>}, {pipeline_mode = #tpu.pipeline_mode<synchronous>, transform_indices = @transform_4, window_bounds = array<i64: 1, 64>}, {pipeline_mode = #tpu.pipeline_mode<synchronous>, transform_indices = @transform_5, window_bounds = array<i64: 1, 64>}, {transform_indices = @transform_6, window_bounds = array<i64: 1, 1>}, {transform_indices = @transform_7, window_bounds = array<i64: 1, 1, 256>}]} {
    %c0 = arith.constant 0 : index
    %c0_0 = arith.constant 0 : index
    %0 = vector.load %arg1[%c0, %c0_0] : memref<256x32xbf16, #tpu.memory_space<vmem>>, vector<256x32xbf16>
    %c0_1 = arith.constant 0 : index
    %c0_2 = arith.constant 0 : index
    %1 = vector.load %arg2[%c0_1, %c0_2] : memref<32x64xbf16, #tpu.memory_space<vmem>>, vector<32x64xbf16>
    %cst = arith.constant dense<0.000000e+00> : vector<256x64xf32>
    %2 = tpu.matmul %0, %1, %cst {dimension_numbers = #tpu.dot_dimension_numbers<[1], [0], [0], [1], [0, 0, 1, 1], [], []>} : vector<256x32xbf16>, vector<32x64xbf16>, vector<256x64xf32> -> vector<256x64xf32>
    %c0_3 = arith.constant 0 : index
    %c0_4 = arith.constant 0 : index
    %3 = vector.load %arg3[%c0_3, %c0_4] : memref<1x64xf32, #tpu.memory_space<vmem>>, vector<1x64xf32>
    %4 = vector.broadcast %3 : vector<1x64xf32> to vector<256x64xf32>
    %5 = arith.addf %2, %4 : vector<256x64xf32>
    %cst_5 = arith.constant 0.000000e+00 : f32
    %6 = vector.broadcast %cst_5 : f32 to vector<256x64xf32>
    %7 = arith.maximumf %5, %6 : vector<256x64xf32>
    %8 = arith.truncf %7 : vector<256x64xf32> to vector<256x64xbf16>
    %c0_6 = arith.constant 0 : index
    %c0_7 = arith.constant 0 : index
    %9 = vector.load %arg4[%c0_6, %c0_7] : memref<64x64xbf16, #tpu.memory_space<vmem>>, vector<64x64xbf16>
    %cst_8 = arith.constant dense<0.000000e+00> : vector<256x64xf32>
    %10 = tpu.matmul %8, %9, %cst_8 {dimension_numbers = #tpu.dot_dimension_numbers<[1], [0], [0], [1], [0, 0, 1, 1], [], []>} : vector<256x64xbf16>, vector<64x64xbf16>, vector<256x64xf32> -> vector<256x64xf32>
    %c0_9 = arith.constant 0 : index
    %c0_10 = arith.constant 0 : index
    %11 = vector.load %arg5[%c0_9, %c0_10] : memref<1x64xf32, #tpu.memory_space<vmem>>, vector<1x64xf32>
    %12 = vector.broadcast %11 : vector<1x64xf32> to vector<256x64xf32>
    %13 = arith.addf %10, %12 : vector<256x64xf32>
    %cst_11 = arith.constant 0.000000e+00 : f32
    %14 = vector.broadcast %cst_11 : f32 to vector<256x64xf32>
    %15 = arith.maximumf %13, %14 : vector<256x64xf32>
    %c0_12 = arith.constant 0 : index
    %c0_13 = arith.constant 0 : index
    %16 = vector.load %arg6[%c0_12, %c0_13] : memref<1x64xbf16, #tpu.memory_space<vmem>>, vector<1x64xbf16>
    %17 = arith.truncf %15 : vector<256x64xf32> to vector<256x64xbf16>
    %cst_14 = arith.constant dense<0.000000e+00> : vector<1x256xf32>
    %18 = tpu.matmul %16, %17, %cst_14 {dimension_numbers = #tpu.dot_dimension_numbers<[1], [1], [0], [0], [0, 0, 1, 0], [], []>} : vector<1x64xbf16>, vector<256x64xbf16>, vector<1x256xf32> -> vector<1x256xf32>
    %c0_15 = arith.constant 0 : index
    %c0_16 = arith.constant 0 : index
    %19 = memref.load %arg7[%c0_15, %c0_16] : memref<1x1xf32, #tpu.memory_space<smem>>
    %20 = vector.broadcast %19 : f32 to vector<1x256xf32>
    %21 = arith.addf %18, %20 : vector<1x256xf32>
    %c0_17 = arith.constant 0 : index
    %c0_18 = arith.constant 0 : index
    %c0_19 = arith.constant 0 : index
    %22 = vector.load %arg8[%c0_17, %c0_18, %c0_19] : memref<1x1x256xf32, #tpu.memory_space<vmem>>, vector<1x1x256xf32>
    %23 = vector.shape_cast %22 : vector<1x1x256xf32> to vector<1x256xf32>
    %24 = vector.shape_cast %21 : vector<1x256xf32> to vector<1x1x256xf32>
    tpu.vector_store %arg8[%c0_17, %c0_18, %c0_19], %24 {strides = array<i32>} : memref<1x1x256xf32, #tpu.memory_space<vmem>>, vector<1x1x256xf32>,
    return
  }
  func.func @transform_0(%arg0: i32) -> (i32, i32) {
    %c0_i32 = arith.constant 0 : i32
    %c0_i32_0 = arith.constant 0 : i32
    return %arg0, %c0_i32 : i32, i32
  }
  func.func @transform_1(%arg0: i32) -> (i32, i32) {
    %c0_i32 = arith.constant 0 : i32
    %c0_i32_0 = arith.constant 0 : i32
    %c0_i32_1 = arith.constant 0 : i32
    return %c0_i32, %c0_i32_0 : i32, i32
  }
  func.func @transform_2(%arg0: i32) -> (i32, i32) {
    %c0_i32 = arith.constant 0 : i32
    %c0_i32_0 = arith.constant 0 : i32
    %c0_i32_1 = arith.constant 0 : i32
    return %c0_i32, %c0_i32_0 : i32, i32
  }
  func.func @transform_3(%arg0: i32) -> (i32, i32) {
    %c0_i32 = arith.constant 0 : i32
    %c0_i32_0 = arith.constant 0 : i32
    %c0_i32_1 = arith.constant 0 : i32
    return %c0_i32, %c0_i32_0 : i32, i32
  }
  func.func @transform_4(%arg0: i32) -> (i32, i32) {
    %c0_i32 = arith.constant 0 : i32
    %c0_i32_0 = arith.constant 0 : i32
    %c0_i32_1 = arith.constant 0 : i32
    return %c0_i32, %c0_i32_0 : i32, i32
  }
  func.func @transform_5(%arg0: i32) -> (i32, i32) {
    %c0_i32 = arith.constant 0 : i32
    %c0_i32_0 = arith.constant 0 : i32
    %c0_i32_1 = arith.constant 0 : i32
    return %c0_i32, %c0_i32_0 : i32, i32
  }
  func.func @transform_6(%arg0: i32) -> (i32, i32) {
    %c0_i32 = arith.constant 0 : i32
    %c0_i32_0 = arith.constant 0 : i32
    %c0_i32_1 = arith.constant 0 : i32
    return %c0_i32, %c0_i32_0 : i32, i32
  }
  func.func @transform_7(%arg0: i32) -> (i32, i32, i32) {
    %c0_i32 = arith.constant 0 : i32
    %c0_i32_0 = arith.constant 0 : i32
    %c0_i32_1 = arith.constant 0 : i32
    return %arg0, %c0_i32, %c0_i32_0 : i32, i32, i32
  }
}

</mosaic_0001>

<bundles_post_ra>
// kernel: mlp_forward.1
= control target key start
LH: loop header
LB: loop body
LE: loop exit
PB: predicated region body
PF: predicated region fallthrough
CT: control target
= control target key end

     0   :  { %vm160_vm0 = vcmask 261120   ;;  %vm382_vm1 = vcmask 523264   ;;  %vm651_vm2 = vcmask 1040384   ;;  %s1075_s1 = inlined_call_operand.vmem [shape: bf16[32,64], index: 1, kind: input, shape index: {}]   ;;  %s1076_s2 = inlined_call_operand.vmem [shape: f32[1,64], index: 2, kind: input, shape index: {}]   ;;  %s1077_s0 = inlined_call_operand.vmem [shape: bf16[256,32], index: 0, kind: input, shape index: {}]   ;;  %s1078_s3 = inlined_call_operand.vmem [shape: bf16[64,64], index: 3, kind: input, shape index: {}]   ;;  %s1079_s4 = inlined_call_operand.vmem [shape: f32[1,64], index: 4, kind: input, shape index: {}]   ;;  %s1080_s5 = inlined_call_operand.vmem [shape: bf16[1,64], index: 5, kind: input, shape index: {}]   ;;  %s1081_s6 = inlined_call_operand.<no memory space> [shape: f32[1,1], index: 6, kind: input, shape index: {}]   ;;  %s1082_s7 = inlined_call_operand.vmem [shape: f32[1,1,256], index: 7, kind: output, shape index: {}]  }
   0x1   :  { %v802_v0 = vld [vmem:[%s1075_s1 + $0x8] sm:$0xff]  ;;  %v801_v1 = vld [vmem:[%s1075_s1] sm:$0xff]  ;;  %v795_v5 = vld [vmem:[%s1077_s0 + $0x50] sm:$0xff] }
   0x2   :  { %215 = vmatpush.bf16.msra.mxu0 %v802_v0  ;;  %807 = vmatpush.bf16.msra.mxu3 %v802_v0  ;;  %v785_v2 = vld [vmem:[%s1077_s0] sm:$0xff]  ;;  %v794_v3 = vld [vmem:[%s1077_s0 + $0x48] sm:$0xff]  ;;  %v787_v6 = vld [vmem:[%s1077_s0 + $0x10] sm:$0xff] }
   0x3   :  { %v786_v4 = vld [vmem:[%s1077_s0 + $0x8] sm:$0xff]  ;;  %v796_v7 = vld [vmem:[%s1077_s0 + $0x58] sm:$0xff]  ;;  %v797_v9 = vld [vmem:[%s1077_s0 + $0x60] sm:$0xff] }
   0x4   :  { %v788_v8 = vld [vmem:[%s1077_s0 + $0x18] sm:$0xff]  ;;  %v789_v10 = vld [vmem:[%s1077_s0 + $0x20] sm:$0xff]  ;;  %v798_v11 = vld [vmem:[%s1077_s0 + $0x68] sm:$0xff] }
   0x5   :  { %v790_v12 = vld [vmem:[%s1077_s0 + $0x28] sm:$0xff]  ;;  %v799_v13 = vld [vmem:[%s1077_s0 + $0x70] sm:$0xff]  ;;  %v806_v14 = vld [vmem:[%s1078_s3 + $0x18] sm:$0xff] }
   0x6   :  { %216 = vmatpush.bf16.msra.mxu0 %v801_v1  ;;  %808 = vmatpush.bf16.msra.mxu3 %v801_v1  ;;  %v791_v15 = vld [vmem:[%s1077_s0 + $0x30] sm:$0xff]  ;;  %v800_v16 = vld [vmem:[%s1077_s0 + $0x78] sm:$0xff]  ;;  %v804_v18 = vld [vmem:[%s1078_s3 + $0x8] sm:$0xff] }
   0x7   :  { %435 = vmatpush.bf16.msra.mxu1 %v806_v14  ;;  %809 = vmatpush.bf16.msra.mxu2 %v806_v14  ;;  %v805_v17 = vld [vmem:[%s1078_s3 + $0x10] sm:$0xff]  ;;  %v803_v19 = vld [vmem:[%s1078_s3] sm:$0xff]  ;;  %v792_v20 = vld [vmem:[%s1077_s0 + $0x38] sm:$0xff] }
   0x8   :  { %v793_v21 = vld [vmem:[%s1077_s0 + $0x40] sm:$0xff] }
   0x9   :  { %735 = vmatmul.msk.bf16.vlgmr.msra.gmra.mxu0 %vm160_vm0, %v785_v2  ;;  %744 = vmatmul.msk.bf16.vlgmr.msra.gmra.mxu3 %vm160_vm0, %v794_v3  ;;  %v939_v23 = vld [vmem:[%s1076_s2] ss:$0 sm:$0xff] }
   0xb   :  { %436 = vmatpush.bf16.msra.mxu1 %v805_v17  ;;  %810 = vmatpush.bf16.msra.mxu2 %v805_v17 }
   0xf   :  { %437 = vmatpush.bf16.msra.mxu1 %v804_v18  ;;  %811 = vmatpush.bf16.msra.mxu2 %v804_v18 }
  0x13   :  { %438 = vmatpush.bf16.msra.mxu1 %v803_v19  ;;  %812 = vmatpush.bf16.msra.mxu2 %v803_v19 }
  0x19   :  { %736 = vmatmul.msk.bf16.gmra.mxu0 %vm160_vm0, %v786_v4  ;;  %745 = vmatmul.msk.bf16.gmra.mxu3 %vm160_vm0, %v795_v5 }
  0x29   :  { %737 = vmatmul.msk.bf16.gmra.mxu0 %vm160_vm0, %v787_v6  ;;  %746 = vmatmul.msk.bf16.gmra.mxu3 %vm160_vm0, %v796_v7 }
  0x39   :  { %738 = vmatmul.msk.bf16.gmra.mxu0 %vm160_vm0, %v788_v8  ;;  %747 = vmatmul.msk.bf16.gmra.mxu3 %vm160_vm0, %v797_v9 }
  0x49   :  { %739 = vmatmul.msk.bf16.gmra.mxu0 %vm160_vm0, %v789_v10  ;;  %748 = vmatmul.msk.bf16.gmra.mxu3 %vm160_vm0, %v798_v11 }
  0x59   :  { %740 = vmatmul.msk.bf16.gmra.mxu0 %vm160_vm0, %v790_v12  ;;  %749 = vmatmul.msk.bf16.gmra.mxu3 %vm160_vm0, %v799_v13 }
  0x69   :  { %741 = vmatmul.msk.bf16.gmra.mxu0 %vm160_vm0, %v791_v15  ;;  %750 = vmatmul.msk.bf16.gmra.mxu3 %vm160_vm0, %v800_v16 }
  0x79   :  { %742 = vmatmul.msk.bf16.gmra.mxu0 %vm160_vm0, %v792_v20 }
  0x86   :  { %v218_v22 = vpop.f32.mrf.mxu0 }
  0x87   :  { %v219_v25 = vadd.f32 %v939_v23, %v218_v22 }
  0x89   :  { %743 = vmatmul.msk.bf16.gmra.mxu0 %vm160_vm0, %v793_v21  ;;  %v298_v28 = vmax.f32 %v219_v25, 0.0 }
  0x8c   :  { %v263_v24 = vpop.f32.mrf.mxu3 }
  0x8d   :  { %v264_v30 = vadd.f32 %v939_v23, %v263_v24 }
  0x8e   :  { %v220_v26 = vpop.f32.mrf.mxu0 }
  0x8f   :  { %v221_v27 = vadd.f32 %v939_v23, %v220_v26  ;;  %v316_v35 = vmax.f32 %v264_v30, 0.0 }
  0x91   :  { %v299_v29 = vmax.f32 %v221_v27, 0.0 }
  0x93   :  { %v330_v31 = vpack.c.bf16 %v299_v29, %v298_v28 }
  0x94   :  { %v265_v32 = vpop.f32.mrf.mxu3 }
  0x95   :  { %v266_v33 = vadd.f32 %v939_v23, %v265_v32  ;;  %767 = vmatmul.msk.bf16.vlgmr.msra.gmra.mxu1 %vm382_vm1, %v330_v31 }
  0x96   :  { %v223_v34 = vpop.f32.mrf.mxu0 }
  0x97   :  { %v317_v36 = vmax.f32 %v266_v33, 0.0  ;;  %v224_v39 = vadd.f32 %v939_v23, %v223_v34 }
  0x99   :  { %v947_v37 = vpack.c.bf16 %v317_v36, %v316_v35  ;;  %v300_v42 = vmax.f32 %v224_v39, 0.0 }
  0x9c   :  { %v268_v38 = vpop.f32.mrf.mxu3 }
  0x9d   :  { %v269_v44 = vadd.f32 %v939_v23, %v268_v38 }
  0x9e   :  { %v225_v40 = vpop.f32.mrf.mxu0 }
  0x9f   :  { %v226_v41 = vadd.f32 %v939_v23, %v225_v40  ;;  %v318_v49 = vmax.f32 %v269_v44, 0.0 }
  0xa1   :  { %v301_v43 = vmax.f32 %v226_v41, 0.0 }
  0xa3   :  { %v331_v45 = vpack.c.bf16 %v301_v43, %v300_v42 }
  0xa4   :  { %v270_v46 = vpop.f32.mrf.mxu3 }
  0xa5   :  { %v271_v47 = vadd.f32 %v939_v23, %v270_v46  ;;  %768 = vmatmul.msk.bf16.gmra.mxu1 %vm382_vm1, %v331_v45 }
  0xa6   :  { %v228_v48 = vpop.f32.mrf.mxu0 }
  0xa7   :  { %v319_v50 = vmax.f32 %v271_v47, 0.0  ;;  %v229_v53 = vadd.f32 %v939_v23, %v228_v48 }
  0xa9   :  { %v340_v51 = vpack.c.bf16 %v319_v50, %v318_v49  ;;  %v302_v56 = vmax.f32 %v229_v53, 0.0 }
  0xab   :  { %777 = vmatmul.msk.bf16.vlgmr.msra.gmra.mxu2 %vm382_vm1, %v340_v51 }
  0xac   :  { %v273_v52 = vpop.f32.mrf.mxu3 }
  0xad   :  { %v274_v58 = vadd.f32 %v939_v23, %v273_v52 }
  0xae   :  { %v230_v54 = vpop.f32.mrf.mxu0 }
  0xaf   :  { %v231_v55 = vadd.f32 %v939_v23, %v230_v54  ;;  %v320_v63 = vmax.f32 %v274_v58, 0.0 }
  0xb1   :  { %v303_v57 = vmax.f32 %v231_v55, 0.0 }
  0xb3   :  { %v332_v59 = vpack.c.bf16 %v303_v57, %v302_v56 }
  0xb4   :  { %v275_v60 = vpop.f32.mrf.mxu3 }
  0xb5   :  { %v276_v61 = vadd.f32 %v939_v23, %v275_v60  ;;  %769 = vmatmul.msk.bf16.gmra.mxu1 %vm382_vm1, %v332_v59 }
  0xb6   :  { %v233_v62 = vpop.f32.mrf.mxu0 }
  0xb7   :  { %v321_v0 = vmax.f32 %v276_v61, 0.0  ;;  %v234_v3 = vadd.f32 %v939_v23, %v233_v62 }
  0xb9   :  { %v341_v1 = vpack.c.bf16 %v321_v0, %v320_v63  ;;  %v304_v6 = vmax.f32 %v234_v3, 0.0 }
  0xbb   :  { %778 = vmatmul.msk.bf16.gmra.mxu2 %vm382_vm1, %v341_v1 }
  0xbc   :  { %v278_v2 = vpop.f32.mrf.mxu3 }
  0xbd   :  { %v279_v8 = vadd.f32 %v939_v23, %v278_v2 }
  0xbe   :  { %v235_v4 = vpop.f32.mrf.mxu0 }
  0xbf   :  { %v236_v5 = vadd.f32 %v939_v23, %v235_v4  ;;  %v322_v13 = vmax.f32 %v279_v8, 0.0 }
  0xc1   :  { %v305_v7 = vmax.f32 %v236_v5, 0.0 }
  0xc3   :  { %v333_v9 = vpack.c.bf16 %v305_v7, %v304_v6 }
  0xc4   :  { %v280_v10 = vpop.f32.mrf.mxu3 }
  0xc5   :  { %v281_v11 = vadd.f32 %v939_v23, %v280_v10  ;;  %770 = vmatmul.msk.bf16.gmra.mxu1 %vm382_vm1, %v333_v9  ;;  %v993_v10 = vld [vmem:[%s1079_s4] ss:$0 sm:$0xff] }
  0xc6   :  { %v238_v12 = vpop.f32.mrf.mxu0 }
  0xc7   :  { %v323_v14 = vmax.f32 %v281_v11, 0.0  ;;  %v239_v17 = vadd.f32 %v939_v23, %v238_v12 }
  0xc9   :  { %v342_v15 = vpack.c.bf16 %v323_v14, %v322_v13  ;;  %v306_v20 = vmax.f32 %v239_v17, 0.0 }
  0xcb   :  { %779 = vmatmul.msk.bf16.gmra.mxu2 %vm382_vm1, %v342_v15 }
  0xcc   :  { %v283_v16 = vpop.f32.mrf.mxu3 }
  0xcd   :  { %v284_v22 = vadd.f32 %v939_v23, %v283_v16 }
  0xce   :  { %v240_v18 = vpop.f32.mrf.mxu0 }
  0xcf   :  { %v241_v19 = vadd.f32 %v939_v23, %v240_v18  ;;  %v324_v28 = vmax.f32 %v284_v22, 0.0 }
  0xd1   :  { %v307_v21 = vmax.f32 %v241_v19, 0.0 }
  0xd3   :  { %v334_v24 = vpack.c.bf16 %v307_v21, %v306_v20 }
  0xd4   :  { %v285_v25 = vpop.f32.mrf.mxu3 }
  0xd5   :  { %v286_v26 = vadd.f32 %v939_v23, %v285_v25  ;;  %771 = vmatmul.msk.bf16.gmra.mxu1 %vm382_vm1, %v334_v24 }
  0xd6   :  { %v243_v27 = vpop.f32.mrf.mxu0 }
  0xd7   :  { %v325_v29 = vmax.f32 %v286_v26, 0.0  ;;  %v244_v32 = vadd.f32 %v939_v23, %v243_v27 }
  0xd9   :  { %v343_v30 = vpack.c.bf16 %v325_v29, %v324_v28  ;;  %v308_v35 = vmax.f32 %v244_v32, 0.0 }
  0xdb   :  { %780 = vmatmul.msk.bf16.gmra.mxu2 %vm382_vm1, %v343_v30 }
  0xdc   :  { %v288_v31 = vpop.f32.mrf.mxu3 }
  0xdd   :  { %v289_v38 = vadd.f32 %v939_v23, %v288_v31 }
  0xde   :  { %v245_v33 = vpop.f32.mrf.mxu0 }
  0xdf   :  { %v246_v34 = vadd.f32 %v939_v23, %v245_v33  ;;  %v326_v43 = vmax.f32 %v289_v38, 0.0 }
  0xe1   :  { %v309_v36 = vmax.f32 %v246_v34, 0.0 }
  0xe3   :  { %v335_v39 = vpack.c.bf16 %v309_v36, %v308_v35 }
  0xe4   :  { %v290_v40 = vpop.f32.mrf.mxu3 }
  0xe5   :  { %v291_v41 = vadd.f32 %v939_v23, %v290_v40  ;;  %772 = vmatmul.msk.bf16.gmra.mxu1 %vm382_vm1, %v335_v39 }
  0xe6   :  { %v248_v42 = vpop.f32.mrf.mxu0 }
  0xe7   :  { %v327_v44 = vmax.f32 %v291_v41, 0.0  ;;  %v249_v47 = vadd.f32 %v939_v23, %v248_v42 }
  0xe9   :  { %v344_v45 = vpack.c.bf16 %v327_v44, %v326_v43  ;;  %v310_v50 = vmax.f32 %v249_v47, 0.0 }
  0xeb   :  { %781 = vmatmul.msk.bf16.gmra.mxu2 %vm382_vm1, %v344_v45 }
  0xec   :  { %v293_v46 = vpop.f32.mrf.mxu3 }
  0xed   :  { %v294_v52 = vadd.f32 %v939_v23, %v293_v46 }
  0xee   :  { %v250_v48 = vpop.f32.mrf.mxu0 }
  0xef   :  { %v251_v49 = vadd.f32 %v939_v23, %v250_v48  ;;  %v328_v57 = vmax.f32 %v294_v52, 0.0 }
  0xf1   :  { %v311_v51 = vmax.f32 %v251_v49, 0.0 }
  0xf3   :  { %v336_v53 = vpack.c.bf16 %v311_v51, %v310_v50 }
  0xf4   :  { %v295_v54 = vpop.f32.mrf.mxu3 }
  0xf5   :  { %v296_v55 = vadd.f32 %v939_v23, %v295_v54  ;;  %773 = vmatmul.msk.bf16.gmra.mxu1 %vm382_vm1, %v336_v53 }
  0xf6   :  { %v253_v56 = vpop.f32.mrf.mxu0 }
  0xf7   :  { %v329_v58 = vmax.f32 %v296_v55, 0.0  ;;  %v254_v60 = vadd.f32 %v939_v23, %v253_v56 }
  0xf9   :  { %v345_v59 = vpack.c.bf16 %v329_v58, %v328_v57  ;;  %v312_v63 = vmax.f32 %v254_v60, 0.0 }
  0xfb   :  { %782 = vmatmul.msk.bf16.gmra.mxu2 %vm382_vm1, %v345_v59 }
  0xfe   :  { %v255_v61 = vpop.f32.mrf.mxu0 }
  0xff   :  { %v256_v62 = vadd.f32 %v939_v23, %v255_v61 }
 0x101   :  { %v313_v0 = vmax.f32 %v256_v62, 0.0 }
 0x103   :  { %v337_v1 = vpack.c.bf16 %v313_v0, %v312_v63 }
 0x105   :  { %774 = vmatmul.msk.bf16.gmra.mxu1 %vm382_vm1, %v337_v1 }
 0x106   :  { %v258_v2 = vpop.f32.mrf.mxu0 }
 0x107   :  { %v259_v3 = vadd.f32 %v939_v23, %v258_v2 }
 0x109   :  { %v314_v5 = vmax.f32 %v259_v3, 0.0 }
 0x10e   :  { %v260_v4 = vpop.f32.mrf.mxu0 }
 0x10f   :  { %v261_v6 = vadd.f32 %v939_v23, %v260_v4 }
 0x111   :  { %v315_v7 = vmax.f32 %v261_v6, 0.0 }
 0x112   :  { %v440_v8 = vpop.f32.mrf.mxu1 }
 0x113   :  { %v338_v9 = vpack.c.bf16 %v315_v7, %v314_v5  ;;  %v441_v11 = vadd.f32 %v993_v10, %v440_v8 }
 0x115   :  { %775 = vmatmul.msk.bf16.gmra.mxu1 %vm382_vm1, %v338_v9  ;;  %v520_v14 = vmax.f32 %v441_v11, 0.0 }
 0x11a   :  { %v442_v12 = vpop.f32.mrf.mxu1 }
 0x11b   :  { %v443_v13 = vadd.f32 %v993_v10, %v442_v12 }
 0x11d   :  { %v521_v15 = vmax.f32 %v443_v13, 0.0 }
 0x11f   :  { %v998_v16 = vpack.c.bf16 %v521_v15, %v520_v14 }
 0x122   :  { %v445_v23 = vpop.f32.mrf.mxu1 }
 0x123   :  { %v446_v17 = vadd.f32 %v993_v10, %v445_v23 }
 0x125   :  { %776 = vmatmul.msk.bf16.gmra.mxu1 %vm382_vm1, %v947_v37  ;;  %v522_v20 = vmax.f32 %v446_v17, 0.0 }
 0x12a   :  { %v447_v18 = vpop.f32.mrf.mxu1 }
 0x12b   :  { %v448_v19 = vadd.f32 %v993_v10, %v447_v18 }
 0x12d   :  { %v523_v21 = vmax.f32 %v448_v19, 0.0 }
 0x12e   :  { %v490_v22 = vpop.f32.mrf.mxu2 }
 0x12f   :  { %v1004_v24 = vpack.c.bf16 %v523_v21, %v522_v20  ;;  %v491_v26 = vadd.f32 %v993_v10, %v490_v22 }
 0x131   :  { %v540_v29 = vmax.f32 %v491_v26, 0.0 }
 0x132   :  { %v450_v25 = vpop.f32.mrf.mxu1 }
 0x133   :  { %v451_v30 = vadd.f32 %v993_v10, %v450_v25 }
 0x135   :  { %v524_v34 = vmax.f32 %v451_v30, 0.0 }
 0x136   :  { %v492_v27 = vpop.f32.mrf.mxu2 }
 0x137   :  { %v493_v28 = vadd.f32 %v993_v10, %v492_v27 }
 0x139   :  { %v541_v37 = vmax.f32 %v493_v28, 0.0 }
 0x13a   :  { %v452_v31 = vpop.f32.mrf.mxu1 }
 0x13b   :  { %v453_v32 = vadd.f32 %v993_v10, %v452_v31  ;;  %v1010_v33 = vpack.c.bf16 %v541_v37, %v540_v29 }
 0x13d   :  { %v525_v35 = vmax.f32 %v453_v32, 0.0 }
 0x13e   :  { %v495_v36 = vpop.f32.mrf.mxu2 }
 0x13f   :  { %v1012_v38 = vpack.c.bf16 %v525_v35, %v524_v34  ;;  %v496_v40 = vadd.f32 %v993_v10, %v495_v36 }
 0x141   :  { %v542_v43 = vmax.f32 %v496_v40, 0.0 }
 0x142   :  { %v455_v39 = vpop.f32.mrf.mxu1 }
 0x143   :  { %v456_v44 = vadd.f32 %v993_v10, %v455_v39 }
 0x145   :  { %v526_v49 = vmax.f32 %v456_v44, 0.0 }
 0x146   :  { %v497_v41 = vpop.f32.mrf.mxu2 }
 0x147   :  { %v498_v42 = vadd.f32 %v993_v10, %v497_v41 }
 0x149   :  { %v543_v45 = vmax.f32 %v498_v42, 0.0 }
 0x14a   :  { %v457_v46 = vpop.f32.mrf.mxu1 }
 0x14b   :  { %v458_v47 = vadd.f32 %v993_v10, %v457_v46  ;;  %v1018_v48 = vpack.c.bf16 %v543_v45, %v542_v43 }
 0x14d   :  { %v527_v50 = vmax.f32 %v458_v47, 0.0 }
 0x14e   :  { %v500_v51 = vpop.f32.mrf.mxu2 }
 0x14f   :  { %v1020_v52 = vpack.c.bf16 %v527_v50, %v526_v49  ;;  %v501_v54 = vadd.f32 %v993_v10, %v500_v51 }
 0x151   :  { %v544_v57 = vmax.f32 %v501_v54, 0.0 }
 0x152   :  { %v460_v53 = vpop.f32.mrf.mxu1 }
 0x153   :  { %v461_v58 = vadd.f32 %v993_v10, %v460_v53 }
 0x155   :  { %v528_v63 = vmax.f32 %v461_v58, 0.0 }
 0x156   :  { %v502_v55 = vpop.f32.mrf.mxu2 }
 0x157   :  { %v503_v56 = vadd.f32 %v993_v10, %v502_v55 }
 0x159   :  { %v545_v59 = vmax.f32 %v503_v56, 0.0 }
 0x15a   :  { %v462_v60 = vpop.f32.mrf.mxu1 }
 0x15b   :  { %v463_v61 = vadd.f32 %v993_v10, %v462_v60  ;;  %v565_v62 = vpack.c.bf16 %v545_v59, %v544_v57 }
 0x15d   :  { %v529_v0 = vmax.f32 %v463_v61, 0.0  ;;  %v611_v60 = vsel %vm382_vm1, %v565_v62, 0  ;;  %v605_v62 = vsel %vm382_vm1, %v1010_v33, 0 }
 0x15e   :  { %v505_v1 = vpop.f32.mrf.mxu2 }
 0x15f   :  { %v557_v2 = vpack.c.bf16 %v529_v0, %v528_v63  ;;  %v506_v41 = vadd.f32 %v993_v10, %v505_v1  ;;  %v608_v63 = vsel %vm382_vm1, %v1018_v48, 0 }
 0x161   :  { %v546_v47 = vmax.f32 %v506_v41, 0.0  ;;  %v587_v61 = vsel %vm382_vm1, %v557_v2, 0 }
 0x162   :  { %v465_v3 = vpop.f32.mrf.mxu1 }
 0x163   :  { %v466_v49 = vadd.f32 %v993_v10, %v465_v3  ;;  %v584_v3 = vsel %vm382_vm1, %v1020_v52, 0 }
 0x165   :  { %v530_v55 = vmax.f32 %v466_v49, 0.0 }
 0x166   :  { %v507_v4 = vpop.f32.mrf.mxu2 }
 0x167   :  { %v508_v34 = vadd.f32 %v993_v10, %v507_v4 }
 0x169   :  { %v547_v43 = vmax.f32 %v508_v34, 0.0 }
 0x16a   :  { %v467_v5 = vpop.f32.mrf.mxu1 }
 0x16b   :  { %v468_v44 = vadd.f32 %v993_v10, %v467_v5  ;;  %v566_v53 = vpack.c.bf16 %v547_v43, %v546_v47 }
 0x16d   :  { %v531_v50 = vmax.f32 %v468_v44, 0.0  ;;  %v614_v56 = vsel %vm382_vm1, %v566_v53, 0 }
 0x16e   :  { %v510_v6 = vpop.f32.mrf.mxu2 }
 0x16f   :  { %v511_v21 = vadd.f32 %v993_v10, %v510_v6  ;;  %v558_v57 = vpack.c.bf16 %v531_v50, %v530_v55 }
 0x171   :  { %v548_v37 = vmax.f32 %v511_v21, 0.0  ;;  %v590_v58 = vsel %vm382_vm1, %v558_v57, 0 }
 0x172   :  { %v470_v7 = vpop.f32.mrf.mxu1 }
 0x173   :  { %v471_v31 = vadd.f32 %v993_v10, %v470_v7  ;;  %v581_v7 = vsel %vm382_vm1, %v1012_v38, 0  ;;  %v552_v38 = vld [vmem:[%s1080_s5] sm:$0x1] }
 0x175   :  { %v532_v42 = vmax.f32 %v471_v31, 0.0 }
 0x176   :  { %v512_v8 = vpop.f32.mrf.mxu2 }
 0x177   :  { %v513_v23 = vadd.f32 %v993_v10, %v512_v8 }
 0x179   :  { %v549_v26 = vmax.f32 %v513_v23, 0.0  ;;  %v654_v23 = vlaneseq }
 0x17a   :  { %v472_v9 = vpop.f32.mrf.mxu1 }
 0x17b   :  { %v473_v27 = vadd.f32 %v993_v10, %v472_v9  ;;  %v567_v39 = vpack.c.bf16 %v549_v26, %v548_v37  ;;  %vm656_vm3 = vcmp.lt.s32.totalorder %v654_v23, 256 }
 0x17d   :  { %v533_v35 = vmax.f32 %v473_v27, 0.0  ;;  %v617_v45 = vsel %vm382_vm1, %v567_v39, 0 }
 0x17e   :  { %v515_v11 = vpop.f32.mrf.mxu2 }
 0x17f   :  { %v516_v13 = vadd.f32 %v993_v10, %v515_v11  ;;  %v559_v46 = vpack.c.bf16 %v533_v35, %v532_v42 }
 0x181   :  { %v550_v17 = vmax.f32 %v516_v13, 0.0  ;;  %v593_v51 = vsel %vm382_vm1, %v559_v46, 0 }
 0x182   :  { %v475_v12 = vpop.f32.mrf.mxu1 }
 0x183   :  { %v476_v18 = vadd.f32 %v993_v10, %v475_v12  ;;  %v578_v12 = vsel %vm382_vm1, %v1004_v24, 0  ;;  %v570_v24 = vstv %s1081_s6 }
 0x185   :  { %v534_v28 = vmax.f32 %v476_v18, 0.0 }
 0x186   :  { %v517_v14 = vpop.f32.mrf.mxu2 }
 0x187   :  { %v518_v15 = vadd.f32 %v993_v10, %v517_v14 }
 0x189   :  { %v551_v19 = vmax.f32 %v518_v15, 0.0 }
 0x18a   :  { %v477_v20 = vpop.f32.mrf.mxu1 }
 0x18b   :  { %v478_v22 = vadd.f32 %v993_v10, %v477_v20  ;;  %v568_v25 = vpack.c.bf16 %v551_v19, %v550_v17 }
 0x18d   :  { %v535_v29 = vmax.f32 %v478_v22, 0.0  ;;  %v620_v30 = vsel %vm382_vm1, %v568_v25, 0 }
 0x18e   :  { %635 = vmatpush.bf16.xpose.msrb.mxu3 %v620_v30 }
 0x18f   :  { %v560_v32 = vpack.c.bf16 %v535_v29, %v534_v28 }
 0x191   :  { %v596_v36 = vsel %vm382_vm1, %v560_v32, 0 }
 0x192   :  { %v480_v40 = vpop.f32.mrf.mxu1  ;;  %622 = vmatpush.bf16.xpose.msrb.mxu2 %v596_v36 }
 0x193   :  { %v481_v6 = vadd.f32 %v993_v10, %v480_v40 }
 0x195   :  { %v536_v9 = vmax.f32 %v481_v6, 0.0 }
 0x196   :  { %636 = vmatpush.bf16.xpose.msrb.mxu3 %v617_v45 }
 0x19a   :  { %v482_v54 = vpop.f32.mrf.mxu1  ;;  %623 = vmatpush.bf16.xpose.msrb.mxu2 %v593_v51 }
 0x19b   :  { %v483_v48 = vadd.f32 %v993_v10, %v482_v54 }
 0x19d   :  { %v537_v52 = vmax.f32 %v483_v48, 0.0 }
 0x19e   :  { %637 = vmatpush.bf16.xpose.msrb.mxu3 %v614_v56 }
 0x19f   :  { %v561_v33 = vpack.c.bf16 %v537_v52, %v536_v9 }
 0x1a1   :  { %v599_v13 = vsel %vm382_vm1, %v561_v33, 0 }
 0x1a2   :  { %624 = vmatpush.bf16.xpose.msrb.mxu2 %v590_v58  ;;  %v485_v59 = vpop.f32.mrf.mxu1 }
 0x1a3   :  { %v486_v4 = vadd.f32 %v993_v10, %v485_v59 }
 0x1a5   :  { %v538_v2 = vmax.f32 %v486_v4, 0.0 }
 0x1a6   :  { %638 = vmatpush.bf16.xpose.msrb.mxu3 %v611_v60 }
 0x1aa   :  { %625 = vmatpush.bf16.xpose.msrb.mxu2 %v587_v61  ;;  %v487_v0 = vpop.f32.mrf.mxu1 }
 0x1ab   :  { %v488_v1 = vadd.f32 %v993_v10, %v487_v0  ;;  %v575_v10 = vsel %vm382_vm1, %v998_v16, 0 }
 0x1ad   :  { %v539_v5 = vmax.f32 %v488_v1, 0.0 }
 0x1ae   :  { %639 = vmatpush.bf16.xpose.msrb.mxu3 %v608_v63 }
 0x1af   :  { %v562_v8 = vpack.c.bf16 %v539_v5, %v538_v2 }
 0x1b1   :  { %v602_v11 = vsel %vm382_vm1, %v562_v8, 0 }
 0x1b2   :  { %626 = vmatpush.bf16.xpose.msrb.mxu2 %v584_v3 }
 0x1b6   :  { %640 = vmatpush.bf16.xpose.msrb.mxu3 %v605_v62 }
 0x1ba   :  { %627 = vmatpush.bf16.xpose.msrb.mxu2 %v581_v7 }
 0x1be   :  { %641 = vmatpush.bf16.xpose.msrb.mxu3 %v602_v11 }
 0x1c2   :  { %628 = vmatpush.bf16.xpose.msrb.mxu2 %v578_v12 }
 0x1c6   :  { %642 = vmatpush.bf16.xpose.msrb.mxu3 %v599_v13 }
 0x1ca   :  { %629 = vmatpush.bf16.xpose.msrb.mxu2 %v575_v10 }
 0x1cd   :  { %784 = vmatmul.msk.bf16.vlgmr.msrb.gmra.mxu3 %vm382_vm1, %v552_v38 }
 0x1d1   :  { %783 = vmatmul.msk.bf16.vlgmr.msrb.gmra.mxu2 %vm382_vm1, %v552_v38 }
 0x250   :  { %v644_v14 = vpop.f32.mrf.mxu3 }
 0x251   :  { %v645_v15 = vadd.f32 %v644_v14, %v570_v24 }
 0x253   :  { %v650_v17 = vrot.slane %v645_v15, 7 }
 0x254   :  { %v631_v18 = vpop.f32.mrf.mxu2 }
 0x255   :  { %v632_v16 = vadd.f32 %v631_v18, %v570_v24 }
 0x257   :  { %v652_v19 = vsel %vm651_vm2, %v632_v16, %v650_v17 }
 0x258   :  { %658 = vst.msk [vmem:[%s1082_s7] sm:$0x3] %vm656_vm3, %v652_v19  ;;  %v646_v20 = vpop.f32.mrf.mxu3 }
 0x25c   :  { %v633_v21 = vpop.f32.mrf.mxu2 }

</bundles_post_ra>
